<compile_context>
chip_gen: v5e
topology: v5e:2x2
jax: 0.10.0
libtpu: 0.0.40
codegen_flags: <defaults>
</compile_context>

<pallas_src>
import functools

import jax
import jax.numpy as jnp
from jax import lax
from jax.experimental import pallas as pl
from jax.experimental.pallas import tpu as pltpu

EPS = 1e-12      # F.normalize default eps
LANE = 128       # TPU lane width; pad feature dim to this for dense stores
VMEM_LIMIT = 32 * 1024 * 1024   # explicit scoped-VMEM budget (safe on v5e/v6e/v7x)


def _round_up(v, m):
    return ((v + m - 1) // m) * m


def _pad2(a, rows, cols):
    r, c = a.shape
    return jnp.pad(a, ((0, rows - r), (0, cols - c)))


# ----------------------------- Pallas kernels -----------------------------

def _lin_norm_kernel(x_ref, w_ref, b_ref, h_ref, *, scaling):
    """h = L2-normalize(x @ W + b, dim=1) * scaling   (GNAE pre-pass)."""
    h = jnp.dot(x_ref[...], w_ref[...],
                preferred_element_type=jnp.float32) + b_ref[...]
    ssq = jnp.sum(h * h, axis=1, keepdims=True)
    # rsqrt goes to the EUP slot; the scaling multiply is folded into the factor.
    inv = lax.rsqrt(jnp.maximum(ssq, EPS * EPS)) * scaling
    # TODO(synk): F.dropout(p=0.5) is identity in eval mode (training=False);
    # a training-mode variant would use pltpu.prng_seed + stateful_bernoulli.
    h_ref[...] = (h * inv).astype(h_ref.dtype)


def _lin_both_kernel(x_ref, w1_ref, b1_ref, w2_ref, b2_ref,
                     h1_ref, h2_ref, *, scaling):
    """VGNAE pre-pass: h1 = x@W1+b1 ; h2 = normalize(x@W2+b2)*scaling."""
    x = x_ref[...]
    h1 = jnp.dot(x, w1_ref[...], preferred_element_type=jnp.float32) + b1_ref[...]
    h1_ref[...] = h1.astype(h1_ref.dtype)
    h2 = jnp.dot(x, w2_ref[...], preferred_element_type=jnp.float32) + b2_ref[...]
    ssq = jnp.sum(h2 * h2, axis=1, keepdims=True)
    inv = lax.rsqrt(jnp.maximum(ssq, EPS * EPS)) * scaling
    h2_ref[...] = (h2 * inv).astype(h2_ref.dtype)


def _prop1_kernel(a_ref, h_ref, o_ref, acc_ref):
    """One (row, k) tile of out = A_hat @ h with f32 accumulation over k."""
    k = pl.program_id(1)

    @pl.when(k == 0)
    def _():
        acc_ref[...] = jnp.zeros_like(acc_ref)

    acc_ref[...] += jnp.dot(a_ref[...], h_ref[...],
                            preferred_element_type=jnp.float32)

    @pl.when(k == pl.num_programs(1) - 1)
    def _():
        o_ref[...] = acc_ref[...].astype(o_ref.dtype)


def _prop2_kernel(a_ref, h1_ref, h2_ref, o1_ref, o2_ref, acc1_ref, acc2_ref):
    """Same as _prop1_kernel but reuses each A tile for two feature matrices
    (A is the dominant O(N^2) HBM traffic — read it once for both outputs)."""
    k = pl.program_id(1)

    @pl.when(k == 0)
    def _():
        acc1_ref[...] = jnp.zeros_like(acc1_ref)
        acc2_ref[...] = jnp.zeros_like(acc2_ref)

    a = a_ref[...]
    acc1_ref[...] += jnp.dot(a, h1_ref[...], preferred_element_type=jnp.float32)
    acc2_ref[...] += jnp.dot(a, h2_ref[...], preferred_element_type=jnp.float32)

    @pl.when(k == pl.num_programs(1) - 1)
    def _():
        o1_ref[...] = acc1_ref[...].astype(o1_ref.dtype)
        o2_ref[...] = acc2_ref[...].astype(o2_ref.dtype)


# ----------------------------- pallas_call wrappers -----------------------------

def _linear_pass(kernel_fn, x_p, mats, n_outputs, block, fp,
                 out_dtype=jnp.bfloat16):
    """Row-tiled linear (+normalize) pre-pass producing lane-dense h in bf16."""
    np_, f_in = x_p.shape
    grid = (np_ // block,)
    x_spec = pl.BlockSpec((block, f_in), lambda i: (i, 0))
    w_spec = pl.BlockSpec((f_in, fp), lambda i: (0, 0))
    b_spec = pl.BlockSpec((1, fp), lambda i: (0, 0))
    in_specs = [x_spec]
    for _ in range(len(mats) // 2):
        in_specs += [w_spec, b_spec]
    h_spec = pl.BlockSpec((block, fp), lambda i: (i, 0))
    out_shape = tuple(jax.ShapeDtypeStruct((np_, fp), out_dtype)
                      for _ in range(n_outputs))
    out_specs = tuple(h_spec for _ in range(n_outputs))
    if n_outputs == 1:
        out_shape, out_specs = out_shape[0], out_specs[0]
    return pl.pallas_call(
        kernel_fn,
        grid=grid,
        in_specs=in_specs,
        out_specs=out_specs,
        out_shape=out_shape,
        compiler_params=pltpu.CompilerParams(
            dimension_semantics=("parallel",),
            vmem_limit_bytes=VMEM_LIMIT),
    )(x_p, *mats)


def _propagate(a_p, hs, block_m, block_k, out_dtype=jnp.float32):
    """Tiled out_j = A_hat @ h_j for j in hs, pipelined over (row, k) tiles."""
    np_m, np_k = a_p.shape
    fp = hs[0].shape[1]
    n_out = len(hs)
    grid = (np_m // block_m, np_k // block_k)
    a_spec = pl.BlockSpec((block_m, block_k), lambda i, k: (i, k))
    h_spec = pl.BlockSpec((block_k, fp), lambda i, k: (k, 0))
    o_spec = pl.BlockSpec((block_m, fp), lambda i, k: (i, 0))
    kernel = _prop1_kernel if n_out == 1 else _prop2_kernel

    out_shape = tuple(jax.ShapeDtypeStruct((np_m, fp), out_dtype)
                      for _ in range(n_out))
    out_specs = tuple(o_spec for _ in range(n_out))
    scratch = [pltpu.VMEM((block_m, fp), jnp.float32) for _ in range(n_out)]

    flops = int(2 * np_m * np_k * fp * n_out)
    bytes_acc = int(a_p.size * a_p.dtype.itemsize
                    + sum(h.size * h.dtype.itemsize for h in hs)
                    + n_out * np_m * fp * jnp.dtype(out_dtype).itemsize)

    if n_out == 1:
        out_shape, out_specs = out_shape[0], out_specs[0]

    res = pl.pallas_call(
        kernel,
        grid=grid,
        in_specs=[a_spec] + [h_spec] * n_out,
        out_specs=out_specs,
        out_shape=out_shape,
        scratch_shapes=scratch,
        compiler_params=pltpu.CompilerParams(
            dimension_semantics=("parallel", "arbitrary"),
            vmem_limit_bytes=VMEM_LIMIT),
        cost_estimate=pl.CostEstimate(flops=flops, transcendentals=0,
                                      bytes_accessed=bytes_acc),
    )(a_p, *hs)
    return (res,) if n_out == 1 else res


# ------------------------------- JAX glue ----------------------------------

def normalized_adjacency(edge_index, num_nodes):
    """Dense GCN-normalized adjacency with self loops (APPNP K=1, alpha=0)."""
    src = edge_index[0]
    dst = edge_index[1]
    a = jnp.zeros((num_nodes, num_nodes), jnp.float32).at[dst, src].add(1.0)
    a = a + jnp.eye(num_nodes, dtype=jnp.float32)  # add self loops
    deg = jnp.sum(a, axis=1)
    dinv = jnp.where(deg > 0, 1.0 / jnp.sqrt(deg), 0.0)
    return dinv[:, None] * a * dinv[None, :]


def encoder_forward(x, edge_index, params, model="GNAE", scaling_factor=1.8,
                    block=512, prop_dtype=jnp.bfloat16):
    # TODO(synk): for realistic graphs a sparse/CSR propagation via
    # PrefetchScalarGridSpec would replace this dense O(N^2) adjacency.
    n, f_in = x.shape
    f_out = params["w1"].shape[1]
    block = min(block, _round_up(n, LANE))
    np_ = _round_up(n, block)
    fp = _round_up(f_out, LANE)          # lane-dense feature dimension

    a_hat = normalized_adjacency(edge_index, n)
    a_p = _pad2(a_hat, np_, np_).astype(prop_dtype)   # bf16 A: halves HBM bytes
    x_p = _pad2(x, np_, f_in)
    w1 = _pad2(params["w1"], f_in, fp)
    b1 = _pad2(params["b1"].reshape(1, f_out), 1, fp)

    if model == "GNAE":
        h = _linear_pass(
            functools.partial(_lin_norm_kernel, scaling=scaling_factor),
            x_p, (w1, b1), 1, block, fp, out_dtype=prop_dtype)
        (out,) = _propagate(a_p, (h,), block, block)
        return out[:n, :f_out]

    if model == "VGNAE":
        w2 = _pad2(params["w2"], f_in, fp)
        b2 = _pad2(params["b2"].reshape(1, f_out), 1, fp)
        h1, h2 = _linear_pass(
            functools.partial(_lin_both_kernel, scaling=scaling_factor),
            x_p, (w1, b1, w2, b2), 2, block, fp, out_dtype=prop_dtype)
        o1, o2 = _propagate(a_p, (h1, h2), block, block)
        # module returns (x, x_) = (prop(normalize(linear2)), prop(linear1))
        return o2[:n, :f_out], o1[:n, :f_out]

    return x


# --------------------------------- main -------------------------------------

if __name__ == "__main__":
    N, F_IN, F_OUT = 200, 32, 16     # N not a tile multiple -> exercises padding
    SCALING = 1.8
    BLOCK = 128                      # small tiles so the (row, k) grid is exercised

    key = jax.random.PRNGKey(0)
    kx, k1, k2, k3, k4 = jax.random.split(key, 5)

    x = jax.random.normal(kx, (N, F_IN), dtype=jnp.float32)

    # Deterministic edge list (2, E): ring + chord edges, no self loops / dups.
    src = jnp.concatenate([jnp.arange(N), jnp.arange(N)])
    dst = jnp.concatenate([(jnp.arange(N) + 1) % N, (jnp.arange(N) + 3) % N])
    edge_index = jnp.stack([src, dst]).astype(jnp.int32)

    params = {
        "w1": 0.1 * jax.random.normal(k1, (F_IN, F_OUT), dtype=jnp.float32),
        "b1": 0.1 * jax.random.normal(k2, (F_OUT,), dtype=jnp.float32),
        "w2": 0.1 * jax.random.normal(k3, (F_IN, F_OUT), dtype=jnp.float32),
        "b2": 0.1 * jax.random.normal(k4, (F_OUT,), dtype=jnp.float32),
    }

    # Run Pallas kernels.
    out_gnae = encoder_forward(x, edge_index, params, model="GNAE",
                               scaling_factor=SCALING, block=BLOCK)
    out_v, out_vu = encoder_forward(x, edge_index, params, model="VGNAE",
                                    scaling_factor=SCALING, block=BLOCK)
    jax.block_until_ready((out_gnae, out_v, out_vu))

    # Plain-JAX f32 reference. The kernel carries A/h in bf16 (f32 accumulate),
    # so the tolerance is loosened accordingly.
    a_hat = normalized_adjacency(edge_index, N)
    h1 = x @ params["w1"] + params["b1"]
    h2 = x @ params["w2"] + params["b2"]
    n1 = h1 / jnp.maximum(jnp.linalg.norm(h1, axis=1, keepdims=True), EPS) * SCALING
    n2 = h2 / jnp.maximum(jnp.linalg.norm(h2, axis=1, keepdims=True), EPS) * SCALING
    ref_gnae = a_hat @ n1
    ref_v = a_hat @ n2
    ref_vu = a_hat @ h1

    assert out_gnae.shape == (N, F_OUT)
    assert out_v.shape == (N, F_OUT) and out_vu.shape == (N, F_OUT)
    assert jnp.allclose(out_gnae, ref_gnae, rtol=3e-2, atol=3e-2)
    assert jnp.allclose(out_v, ref_v, rtol=3e-2, atol=3e-2)
    assert jnp.allclose(out_vu, ref_vu, rtol=3e-2, atol=3e-2)

    print("KERNEL_OK")
</pallas_src>

<mosaic_0001>
module attributes {stable_mosaic.version = 11 : i64} {
  func.func @_lin_norm_kernel(%arg0: i32, %arg1: memref<128x32xf32, #tpu.memory_space<vmem>>, %arg2: memref<32x128xf32, #tpu.memory_space<vmem>>, %arg3: memref<1x128xf32, #tpu.memory_space<vmem>>, %arg4: memref<128x128xbf16, #tpu.memory_space<vmem>>) attributes {dimension_semantics = [#tpu.dimension_semantics<parallel>], iteration_bounds = array<i64: 2>, scalar_prefetch = 0 : i64, scratch_operands = 0 : i64, tpu.core_type = #tpu.core_type<tc>, window_params = [{transform_indices = @transform_0, window_bounds = array<i64: 128, 32>}, {pipeline_mode = #tpu.pipeline_mode<synchronous>, transform_indices = @transform_1, window_bounds = array<i64: 32, 128>}, {pipeline_mode = #tpu.pipeline_mode<synchronous>, transform_indices = @transform_2, window_bounds = array<i64: 1, 128>}, {transform_indices = @transform_3, window_bounds = array<i64: 128, 128>}]} {
    %c0 = arith.constant 0 : index
    %c0_0 = arith.constant 0 : index
    %0 = vector.load %arg1[%c0, %c0_0] : memref<128x32xf32, #tpu.memory_space<vmem>>, vector<128x32xf32>
    %c0_1 = arith.constant 0 : index
    %c0_2 = arith.constant 0 : index
    %1 = vector.load %arg2[%c0_1, %c0_2] : memref<32x128xf32, #tpu.memory_space<vmem>>, vector<32x128xf32>
    %cst = arith.constant dense<0.000000e+00> : vector<128x128xf32>
    %2 = tpu.matmul %0, %1, %cst {dimension_numbers = #tpu.dot_dimension_numbers<[1], [0], [0], [1], [0, 0, 1, 1], [], []>} : vector<128x32xf32>, vector<32x128xf32>, vector<128x128xf32> -> vector<128x128xf32>
    %c0_3 = arith.constant 0 : index
    %c0_4 = arith.constant 0 : index
    %3 = vector.load %arg3[%c0_3, %c0_4] : memref<1x128xf32, #tpu.memory_space<vmem>>, vector<1x128xf32>
    %4 = vector.broadcast %3 : vector<1x128xf32> to vector<128x128xf32>
    %5 = arith.addf %2, %4 : vector<128x128xf32>
    %6 = arith.mulf %5, %5 : vector<128x128xf32>
    %cst_5 = arith.constant dense<0.000000e+00> : vector<128xf32>
    %7 = vector.multi_reduction <add>, %6, %cst_5 [1] : vector<128x128xf32> to vector<128xf32>
    %8 = vector.shape_cast %7 : vector<128xf32> to vector<128x1xf32>
    %cst_6 = arith.constant 1.000000e-24 : f32
    %9 = vector.broadcast %cst_6 : f32 to vector<128x1xf32>
    %10 = arith.maximumf %8, %9 : vector<128x1xf32>
    %11 = math.rsqrt %10 : vector<128x1xf32>
    %cst_7 = arith.constant 1.800000e+00 : f32
    %12 = vector.broadcast %cst_7 : f32 to vector<128x1xf32>
    %13 = arith.mulf %11, %12 : vector<128x1xf32>
    %14 = vector.broadcast %13 : vector<128x1xf32> to vector<128x128xf32>
    %15 = arith.mulf %5, %14 : vector<128x128xf32>
    %16 = arith.truncf %15 : vector<128x128xf32> to vector<128x128xbf16>
    %c0_8 = arith.constant 0 : index
    %c0_9 = arith.constant 0 : index
    %17 = vector.load %arg4[%c0_8, %c0_9] : memref<128x128xbf16, #tpu.memory_space<vmem>>, vector<128x128xbf16>
    tpu.vector_store %arg4[%c0_8, %c0_9], %16 {strides = array<i32>} : memref<128x128xbf16, #tpu.memory_space<vmem>>, vector<128x128xbf16>,
    return
  }
  func.func @transform_0(%arg0: i32) -> (i32, i32) {
    %c0_i32 = arith.constant 0 : i32
    %c0_i32_0 = arith.constant 0 : i32
    return %arg0, %c0_i32 : i32, i32
  }
  func.func @transform_1(%arg0: i32) -> (i32, i32) {
    %c0_i32 = arith.constant 0 : i32
    %c0_i32_0 = arith.constant 0 : i32
    %c0_i32_1 = arith.constant 0 : i32
    return %c0_i32, %c0_i32_0 : i32, i32
  }
  func.func @transform_2(%arg0: i32) -> (i32, i32) {
    %c0_i32 = arith.constant 0 : i32
    %c0_i32_0 = arith.constant 0 : i32
    %c0_i32_1 = arith.constant 0 : i32
    return %c0_i32, %c0_i32_0 : i32, i32
  }
  func.func @transform_3(%arg0: i32) -> (i32, i32) {
    %c0_i32 = arith.constant 0 : i32
    %c0_i32_0 = arith.constant 0 : i32
    return %arg0, %c0_i32 : i32, i32
  }
}

</mosaic_0001>

<bundles_post_ra>
// kernel: tpu_custom_call.1
= control target key start
LH: loop header
LB: loop body
LE: loop exit
PB: predicated region body
PF: predicated region fallthrough
CT: control target
= control target key end

     0   :  { %8 = vsyncpa [#allocation3], 0  ;;  %s1374_s0 = inlined_call_operand.vmem [shape: f32[256,32], index: 0, kind: input, shape index: {}]   ;;  %s1375_s1 = inlined_call_operand.vmem [shape: f32[32,128], index: 1, kind: input, shape index: {}]   ;;  %s1376_s2 = inlined_call_operand.vmem [shape: f32[1,128], index: 2, kind: input, shape index: {}]   ;;  %s1377_s3 = inlined_call_operand.hbm [shape: bf16[256,128], index: 3, kind: output, shape index: {}]  }
   0x1   :  { %10 = vsyncpa [#allocation3 + $0x1], 0  ;;  %s924_s12 = smov 0   ;;  %s926_s13 = smov 0  }
   0x2   :  { %s928_s14 = smov 0   ;;  %s930_s15 = smov 0  }
   0x3 LB: > { %s945_s16 = sadd.s32 4294967295, %s900_s15   ;;  %s676_s17 = sadd.s32 4294967294, %s900_s15   ;;  %s900_s15 = sphi %s930_s15, %s1399_s15   ;;  %s896_s14 = sphi %s928_s14, %s1398_s14   ;;  %s892_s13 = sphi %s926_s13, %s1397_s13   ;;  %s888_s12 = sphi %s924_s12, %s1396_s12  }
   0x4   : > { %s949_s18 = sadd.s32 1, %s900_s15   ;;  %s91_s19 = sadd.s32 1, %s896_s14 }
   0x5   : > { %s88_s20 = ssub.s32 %s900_s15, %s949_s18  ;;  %p101_p0 = scmp.ne.s32.totalorder %s896_s14, %s892_s13 }
   0x6   : > { %p89_p1 = scmp.eq.s32.totalorder %s88_s20, 0  ;;  %p102_p2 = scmp.eq.s32.totalorder %s945_s16, 1 }
   0x7   : > { %p107_p3 = scmp.ne.s32.totalorder %s892_s13, %s888_s12  ;;  %p108_p4 = scmp.eq.s32.totalorder %s676_s17, 1 }
   0x8   : > { %s960_s21 = scalar_select %p89_p1, %s896_s14, %s91_s19  }
   0x9   : > { %p962_p5 = por %p102_p2, %p101_p0  ;;  %p966_p6 = por %p108_p4, %p107_p3 }
   0xa   : > { %p679_p7 = scmp.ge.s32.totalorder %s900_s15, 1  ;;  %p141_p8 = scmp.lt.s32.totalorder %s900_s15, 3 }
   0xc   : > { %p142_p9 = pnand %p679_p7, %p141_p8 }
   0xd   : > { %s681_s28 = sshll.u32 (!%p142_p9), %s945_s16, 4  ;;  %s162_s17 = sand.u32 (!%p142_p9), 1, %s892_s13  }
   0xe   : > { %145 = sbr.rel (%p142_p9) target bundleno = 351 (0x15f), region = 32  ;;  %p166_p10 = scmp.lt.s32.totalorder (!%p142_p9), %s681_s28, 31 }
   0xf   : > { %s1184_s19 = sshll.u32 (!%p142_p9), %s162_s17, 6  ;;  %s704_s24 = sshll.u32 (!%p142_p9), %s945_s16, 6 }
  0x10   : > { %s1214_s20 = scalar_lea.vmem (!%p142_p9), [#allocation2], %s1184_s19  ;;  %s610_s27 = scalar_lea.hbm (!%p142_p9), %s1377_s3, %s704_s24 }
  0x11   : > { %s611_s16 = sshll.u32 (!%p142_p9), %s1214_s20, 4  ;;  %s599_s29 = scalar_lea.sflag (!%p142_p9), [#allocation3], %s162_s17  ;;  %s612_s16 = int_to_ptr.vmem [resolvable:$true] %s611_s16 }
  0x12   : > { %s858_s7 = scalar_lea.hbm (!%p142_p9), %s1377_s3, 128 }
  0x13   : > { %v191_v0 = vld [vmem:[%s1375_s1 + $0x18] sm:$0xff]  ;;  %v190_v1 = vld [vmem:[%s1375_s1 + $0x10] sm:$0xff]  ;;  %v189_v2 = vld [vmem:[%s1375_s1 + $0x8] sm:$0xff]  ;;  %s1401_s28 = smov (!%p166_p10, %s681_s28), 31  ;;  %vm196_vm0 = vcmask 261120  }
  0x14   : > { %257 = vmatpush.msra.mxu0 %v191_v0  ;;  %752 = vmatpush.msra.mxu1 %v191_v0  ;;  %v188_v3 = vld [vmem:[%s1375_s1] sm:$0xff]  ;;  %s682_s6 = sshll.u32 %s1401_s28, 3  ;;  %s613_s28 = sshll.u32 %s610_s27, 4  ;;  %s614_s28 = int_to_ptr.hbm [resolvable:$true] %s613_s28 }
  0x15   : > { %753 = vmatpush.msra.mxu2 %v191_v0  ;;  %754 = vmatpush.msra.mxu3 %v191_v0  ;;  %s988_s9 = scalar_lea.vmem %s1374_s0, %s682_s6  ;;  %v805_v20 = vld [vmem:[%s1376_s2] ss:$0 sm:$0xff]  ;;  %s852_s30 = sshra.s32 %s614_s28, 4  ;;  %s853_s30 = int_to_ptr.hbm [resolvable:$true] %s852_s30 }
  0x16   : > { %258 = vmatpush.msra.mxu0 %v190_v1  ;;  %755 = vmatpush.msra.mxu1 %v190_v1  ;;  %v172_v4 = vld [vmem:[%s988_s9] sm:$0xff]  ;;  %v173_v8 = vld [vmem:[%s988_s9 + $0x8] sm:$0xff]  ;;  %v174_v12 = vld [vmem:[%s988_s9 + $0x10] sm:$0xff]  ;;  %s854_s4 = scalar_lea.hbm %s853_s30, 64  ;;  %p859_p0 = scmp.lt.s32.totalorder %s853_s30, %s1377_s3 }
  0x17   : > { %756 = vmatpush.msra.mxu2 %v190_v1  ;;  %757 = vmatpush.msra.mxu3 %v190_v1  ;;  %v176_v5 = vld [vmem:[%s988_s9 + $0x20] sm:$0xff]  ;;  %v181_v9 = vld [vmem:[%s988_s9 + $0x48] sm:$0xff]  ;;  %v182_v13 = vld [vmem:[%s988_s9 + $0x50] sm:$0xff]  ;;  %p855_p11 = scmp.ne.s32.totalorder %s853_s30, %s854_s4  ;;  %p860_p1 = scmp.lt.s32.totalorder %s858_s7, %s854_s4 }
  0x18   : > { %259 = vmatpush.msra.mxu0 %v189_v2  ;;  %758 = vmatpush.msra.mxu1 %v189_v2  ;;  %v180_v6 = vld [vmem:[%s988_s9 + $0x40] sm:$0xff]  ;;  %v177_v10 = vld [vmem:[%s988_s9 + $0x28] sm:$0xff]  ;;  %v178_v14 = vld [vmem:[%s988_s9 + $0x30] sm:$0xff] }
  0x19   : > { %759 = vmatpush.msra.mxu2 %v189_v2  ;;  %760 = vmatpush.msra.mxu3 %v189_v2  ;;  %v184_v7 = vld [vmem:[%s988_s9 + $0x60] sm:$0xff]  ;;  %v185_v11 = vld [vmem:[%s988_s9 + $0x68] sm:$0xff]  ;;  %v186_v15 = vld [vmem:[%s988_s9 + $0x70] sm:$0xff]  ;;  %p856_p12 = pnand %p855_p11, %p962_p5  ;;  %p861_p2 = por %p860_p1, %p859_p0 }
  0x1a   : > { %260 = vmatpush.msra.mxu0 %v188_v3  ;;  %761 = vmatpush.msra.mxu1 %v188_v3  ;;  %v175_v16 = vld [vmem:[%s988_s9 + $0x18] sm:$0xff] }
  0x1b   : > { %762 = vmatpush.msra.mxu2 %v188_v3  ;;  %683 = vmatmul.msk.f32.vlgmr.msra.gmra.mxu0 %vm196_vm0, %v172_v4  ;;  %v183_v17 = vld [vmem:[%s988_s9 + $0x58] sm:$0xff]  ;;  %p857_p13 = pneg %p856_p12 }
  0x1c   : > { %687 = vmatmul.msk.f32.vlgmr.msra.gmra.mxu1 %vm196_vm0, %v176_v5  ;;  %691 = vmatmul.msk.f32.vlgmr.msra.gmra.mxu2 %vm196_vm0, %v180_v6  ;;  %v179_v18 = vld [vmem:[%s988_s9 + $0x38] sm:$0xff] }
  0x1d   : > { %763 = vmatpush.msra.mxu3 %v188_v3  ;;  %v187_v19 = vld [vmem:[%s988_s9 + $0x78] sm:$0xff]  ;;  %p862_p3 = pnand %p861_p2, %p857_p13 }
  0x1e   : > { %695 = vmatmul.msk.f32.vlgmr.msra.gmra.mxu3 %vm196_vm0, %v184_v7 }
  0x23   : > { %684 = vmatmul.msk.f32.gmra.mxu0 %vm196_vm0, %v173_v8 }
  0x24   : > { %692 = vmatmul.msk.f32.gmra.mxu2 %vm196_vm0, %v181_v9  ;;  %688 = vmatmul.msk.f32.gmra.mxu1 %vm196_vm0, %v177_v10 }
  0x26   : > { %696 = vmatmul.msk.f32.gmra.mxu3 %vm196_vm0, %v185_v11 }
  0x2b   : > { %685 = vmatmul.msk.f32.gmra.mxu0 %vm196_vm0, %v174_v12 }
  0x2c   : > { %693 = vmatmul.msk.f32.gmra.mxu2 %vm196_vm0, %v182_v13  ;;  %689 = vmatmul.msk.f32.gmra.mxu1 %vm196_vm0, %v178_v14 }
  0x2e   : > { %697 = vmatmul.msk.f32.gmra.mxu3 %vm196_vm0, %v186_v15 }
  0x33   : > { %686 = vmatmul.msk.f32.gmra.mxu0 %vm196_vm0, %v175_v16 }
  0x34   : > { %694 = vmatmul.msk.f32.gmra.mxu2 %vm196_vm0, %v183_v17  ;;  %690 = vmatmul.msk.f32.gmra.mxu1 %vm196_vm0, %v179_v18 }
  0x36   : > { %698 = vmatmul.msk.f32.gmra.mxu3 %vm196_vm0, %v187_v19 }
  0x98   : > { %v262_v21 = vpop.f32.mrf.mxu0 }
  0x99   : > { %v1025_v22 = vadd.f32 %v805_v20, %v262_v21  ;;  %v274_v23 = vpop.f32.mrf.mxu1 }
  0x9a   : > { %v1027_v24 = vadd.f32 %v805_v20, %v274_v23 }
  0x9b   : > { %v310_v25 = vmul.f32 %v1025_v22, %v1025_v22 }
  0x9c   : > { %v314_v26 = vmul.f32 %v1027_v24, %v1027_v24 }
  0x9d   : > { %326 = vadd.xlane.f32.xlu0 %v310_v25 }
  0x9e   : > { %334 = vadd.xlane.f32.xlu2 %v314_v26 }
  0x9f   : > { %v286_v27 = vpop.f32.mrf.mxu2 }
  0xa0   : > { %v1033_v28 = vadd.f32 %v805_v20, %v286_v27  ;;  %v265_v29 = vpop.f32.mrf.mxu0 }
  0xa1   : > { %v298_v30 = vpop.f32.mrf.mxu3  ;;  %v277_v33 = vpop.f32.mrf.mxu1  ;;  %v1043_v37 = vadd.f32 %v805_v20, %v265_v29 }
  0xa2   : > { %v1035_v31 = vadd.f32 %v805_v20, %v298_v30  ;;  %v318_v32 = vmul.f32 %v1033_v28, %v1033_v28  ;;  %v1041_v35 = vadd.f32 %v805_v20, %v277_v33 }
  0xa3   : > { %v311_v43 = vmul.f32 %v1043_v37, %v1043_v37 }
  0xa4   : > { %v322_v34 = vmul.f32 %v1035_v31, %v1035_v31  ;;  %v315_v41 = vmul.f32 %v1041_v35, %v1041_v35 }
  0xa6   : > { %342 = vadd.xlane.f32.xlu2 %v318_v32  ;;  %350 = vadd.xlane.f32.xlu0 %v322_v34 }
  0xa7   : > { %v289_v36 = vpop.f32.mrf.mxu2 }
  0xa8   : > { %v268_v38 = vpop.f32.mrf.mxu0  ;;  %v1053_v45 = vadd.f32 %v805_v20, %v289_v36 }
  0xa9   : > { %v1045_v39 = vadd.f32 %v805_v20, %v268_v38  ;;  %v301_v40 = vpop.f32.mrf.mxu3  ;;  %v280_v47 = vpop.f32.mrf.mxu1 }
  0xaa   : > { %v319_v51 = vmul.f32 %v1053_v45, %v1053_v45  ;;  %v1063_v53 = vadd.f32 %v805_v20, %v280_v47  ;;  %v1085_v3 = vadd.f32 %v805_v20, %v301_v40 }
  0xab   : > { %v312_v42 = vmul.f32 %v1045_v39, %v1045_v39 }
  0xac   : > { %v316_v58 = vmul.f32 %v1063_v53, %v1063_v53  ;;  %v323_v4 = vmul.f32 %v1085_v3, %v1085_v3 }
  0xad   : > { %330 = vadd.xlane.f32.xlu1 %v312_v42 }
  0xae   : > { %336 = vadd.xlane.f32.xlu2 %v315_v41  ;;  %328 = vadd.xlane.f32.xlu0 %v311_v43 }
  0xaf   : > { %v292_v44 = vpop.f32.mrf.mxu2 }
  0xb0   : > { %v1055_v46 = vadd.f32 %v805_v20, %v292_v44  ;;  %v271_v50 = vpop.f32.mrf.mxu0 }
  0xb1   : > { %v304_v48 = vpop.f32.mrf.mxu3  ;;  %v1061_v52 = vadd.f32 %v805_v20, %v271_v50  ;;  %v283_v59 = vpop.f32.mrf.mxu1 }
  0xb2   : > { %v320_v49 = vmul.f32 %v1055_v46, %v1055_v46  ;;  %v1073_v61 = vadd.f32 %v805_v20, %v304_v48  ;;  %v1075_v62 = vadd.f32 %v805_v20, %v283_v59 }
  0xb3   : > { %v313_v56 = vmul.f32 %v1061_v52, %v1061_v52 }
  0xb4   : > { %v324_v0 = vmul.f32 %v1073_v61, %v1073_v61  ;;  %v317_v1 = vmul.f32 %v1075_v62, %v1075_v62 }
  0xb5   : > { %346 = vadd.xlane.f32.xlu1 %v320_v49 }
  0xb6   : > { %344 = vadd.xlane.f32.xlu0 %v319_v51 }
  0xb7   : > { %v295_v54 = vpop.f32.mrf.mxu2 }
  0xb8   : > { %v1065_v55 = vadd.f32 %v805_v20, %v295_v54 }
  0xb9   : > { %v307_v60 = vpop.f32.mrf.mxu3 }
  0xba   : > { %v321_v57 = vmul.f32 %v1065_v55, %v1065_v55  ;;  %v1077_v63 = vadd.f32 %v805_v20, %v307_v60 }
  0xbc   : > { %348 = vadd.xlane.f32.xlu2 %v321_v57  ;;  %v325_v2 = vmul.f32 %v1077_v63, %v1077_v63 }
  0xbd   : > { %332 = vadd.xlane.f32.xlu1 %v313_v56 }
  0xbe   : > { %338 = vadd.xlane.f32.xlu0 %v316_v58 }
  0xc4   : > { %354 = vadd.xlane.f32.xlu2 %v324_v0 }
  0xc5   : > { %340 = vadd.xlane.f32.xlu1 %v317_v1 }
  0xc6   : > { %356 = vadd.xlane.f32.xlu0 %v325_v2 }
  0xcd   : > { %352 = vadd.xlane.f32.xlu1 %v323_v4 }
 0x110   : > { %v327_v5 = vpop.xlane.xlu0 %326 }
 0x111   : > { %v335_v6 = vpop.xlane.xlu2 %334  ;;  %v358_v7 = vmax.f32 %v327_v5, 1e-24 }
 0x112   : > { %v362_v8 = vmax.f32 %v335_v6, 1e-24 }
 0x113   : > { %806 = vrsqrt.f32 %v358_v7  ;;  %vm380_vm4 = vweird.f32 %v358_v7 }
 0x114   : > { %808 = vrsqrt.f32 %v362_v8  ;;  %vm420_vm2 = vweird.f32 %v362_v8 }
 0x119   : > { %v807_v9 = vpop.eup %806  ;;  %v343_v10 = vpop.xlane.xlu2 %342 }
 0x11a   : > { %v351_v11 = vpop.xlane.xlu0 %350  ;;  %v809_v12 = vpop.eup %808  ;;  %v375_v13 = vmul.f32 %v807_v9, %v358_v7  ;;  %v1089_v14 = vmax.f32 %v343_v10, 1e-24  ;;  %vm381_vm1 = vweird.f32 %v807_v9 }
 0x11b   : > { %v415_v15 = vmul.f32 %v809_v12, %v362_v8  ;;  %v1092_v18 = vmax.f32 %v351_v11, 1e-24  ;;  %vm421_vm3 = vweird.f32 %v809_v12  ;;  %vm1111_vm5 = vmor %vm380_vm4, %vm381_vm1 }
 0x11c   : > { %v376_v16 = vmul.f32 %v807_v9, %v375_v13  ;;  %810 = vrsqrt.f32 %v1089_v14  ;;  %vm1115_vm6 = vmor %vm420_vm2, %vm421_vm3  ;;  %vm460_vm7 = vweird.f32 %v1089_v14 }
 0x11d   : > { %v416_v17 = vmul.f32 %v809_v12, %v415_v15  ;;  %812 = vrsqrt.f32 %v1092_v18 }
 0x11e   : > { %v377_v19 = vmul.f32 0.5, %v376_v16 }
 0x11f   : > { %v417_v20 = vmul.f32 0.5, %v416_v17 }
 0x120   : > { %v331_v21 = vpop.xlane.xlu1 %330  ;;  %v378_v23 = vsub.f32 1.5, %v377_v19 }
 0x121   : > { %v337_v25 = vpop.xlane.xlu2 %336  ;;  %v1095_v26 = vmax.f32 %v331_v21, 1e-24  ;;  %v418_v33 = vsub.f32 1.5, %v417_v20 }
 0x122   : > { %v329_v27 = vpop.xlane.xlu0 %328  ;;  %v1097_v29 = vpop.eup %810  ;;  %v1099_v30 = vmax.f32 %v337_v25, 1e-24  ;;  %v379_v36 = vmul.f32 %v807_v9, %v378_v23 }
 0x123   : > { %v1101_v32 = vmax.f32 %v329_v27, 1e-24  ;;  %v455_v34 = vmul.f32 %v1097_v29, %v1089_v14  ;;  %814 = vrsqrt.f32 %v1095_v26  ;;  %v1109_v40 = vpop.eup %812  ;;  %v419_v41 = vmul.f32 %v809_v12, %v418_v33 }
 0x124   : > { %816 = vrsqrt.f32 %v1099_v30  ;;  %v383_v49 = vsel %vm1111_vm5, %v807_v9, %v379_v36  ;;  %v495_v56 = vmul.f32 %v1109_v40, %v1092_v18  ;;  %vm461_vm8 = vweird.f32 %v1097_v29 }
 0x125   : > { %v456_v38 = vmul.f32 %v1097_v29, %v455_v34  ;;  %818 = vrsqrt.f32 %v1101_v32  ;;  %v423_v58 = vsel %vm1115_vm6, %v809_v12, %v419_v41  ;;  %v534_v1 = vmul.f32 1.8, %v383_v49  ;;  %vm1163_vm13 = vmor %vm460_vm7, %vm461_vm8 }
 0x126   : > { %v538_v6 = vmul.f32 1.8, %v423_v58  ;;  %vm430_vm9 = vweird.f32 %v1099_v30  ;;  %v496_v7 = vmul.f32 %v1109_v40, %v495_v56  ;;  %vm390_vm10 = vweird.f32 %v1101_v32 }
 0x127   : > { %v457_v44 = vmul.f32 0.5, %v456_v38  ;;  %v1143_v12 = vmul.f32 %v534_v1, %v1025_v22  ;;  %vm400_vm0 = vweird.f32 %v1095_v26 }
 0x128   : > { %v347_v47 = vpop.xlane.xlu1 %346  ;;  %v554_v22 = vmul.f32 %v538_v6, %v1027_v24  ;;  %v1173_v42 = vmul.f32 0.5, %v496_v7 }
 0x129   : > { %v1119_v48 = vpop.eup %814  ;;  %v1123_v50 = vmax.f32 %v347_v47, 1e-24  ;;  %v458_v2 = vsub.f32 1.5, %v457_v44 }
 0x12a   : > { %v345_v51 = vpop.xlane.xlu0 %344  ;;  %v817_v54 = vpop.eup %816  ;;  %v395_v60 = vmul.f32 %v1119_v48, %v1095_v26  ;;  %vm401_vm15 = vweird.f32 %v1119_v48 }
 0x12b   : > { %v1127_v57 = vmax.f32 %v345_v51, 1e-24  ;;  %v425_v59 = vmul.f32 %v817_v54, %v1099_v30  ;;  %820 = vrsqrt.f32 %v1123_v50  ;;  %v819_v0 = vpop.eup %818  ;;  %v459_v13 = vmul.f32 %v1097_v29, %v458_v2 }
 0x12c   : > { %v385_v5 = vmul.f32 %v819_v0, %v1101_v32  ;;  %v396_v9 = vmul.f32 %v1119_v48, %v395_v60  ;;  %vm431_vm11 = vweird.f32 %v817_v54  ;;  %vm391_vm12 = vweird.f32 %v819_v0 }
 0x12d   : > { %822 = vrsqrt.f32 %v1127_v57  ;;  %v426_v4 = vmul.f32 %v817_v54, %v425_v59  ;;  %v463_v41 = vsel %vm1163_vm13, %v1097_v29, %v459_v13  ;;  %vm432_vm14 = vmor %vm430_vm9, %vm431_vm11  ;;  %vm480_vm2 = vweird.f32 %v1123_v50 }
 0x12e   : > { %v386_v10 = vmul.f32 %v819_v0, %v385_v5  ;;  %v397_v36 = vmul.f32 0.5, %v396_v9  ;;  %vm392_vm1 = vmor %vm390_vm10, %vm391_vm12  ;;  %v542_v51 = vmul.f32 1.8, %v463_v41  ;;  %vm470_vm3 = vweird.f32 %v1127_v57 }
 0x12f   : > { %v427_v8 = vmul.f32 0.5, %v426_v4  ;;  %v349_v11 = vpop.xlane.xlu2 %348  ;;  %vm1247_vm10 = vmor %vm400_vm0, %vm401_vm15  ;;  %vm500_vm0 = vweird.f32 %v1092_v18 }
 0x130   : > { %v1147_v15 = vmax.f32 %v349_v11, 1e-24  ;;  %v333_v16 = vpop.xlane.xlu1 %332  ;;  %v387_v20 = vmul.f32 0.5, %v386_v10 }
 0x131   : > { %v1149_v17 = vpop.eup %820  ;;  %v428_v19 = vsub.f32 1.5, %v427_v8  ;;  %v1151_v21 = vmax.f32 %v333_v16, 1e-24 }
 0x132   : > { %v339_v23 = vpop.xlane.xlu0 %338  ;;  %v475_v27 = vmul.f32 %v1149_v17, %v1123_v50  ;;  %824 = vrsqrt.f32 %v1147_v15  ;;  %v388_v38 = vsub.f32 1.5, %v387_v20  ;;  %vm481_vm5 = vweird.f32 %v1149_v17 }
 0x133   : > { %v1153_v25 = vpop.eup %822  ;;  %v429_v34 = vmul.f32 %v817_v54, %v428_v19  ;;  %826 = vrsqrt.f32 %v1151_v21  ;;  %v1191_v49 = vmax.f32 %v339_v23, 1e-24  ;;  %v558_v19 = vmul.f32 %v542_v51, %v1033_v28  ;;  %vm1234_vm8 = vmor %vm480_vm2, %vm481_vm5 }
 0x134   : > { %v465_v24 = vmul.f32 %v1153_v25, %v1127_v57  ;;  %v476_v14 = vmul.f32 %v1149_v17, %v475_v27  ;;  %v389_v44 = vmul.f32 %v819_v0, %v388_v38  ;;  %vm471_vm4 = vweird.f32 %v1153_v25 }
 0x135   : > { %v433_v43 = vsel %vm432_vm14, %v817_v54, %v429_v34  ;;  %v398_v54 = vsub.f32 1.5, %v397_v36  ;;  %828 = vrsqrt.f32 %v1191_v49  ;;  %vm472_vm6 = vmor %vm470_vm3, %vm471_vm4  ;;  %vm490_vm7 = vweird.f32 %v1147_v15 }
 0x136   : > { %v466_v47 = vmul.f32 %v1153_v25, %v465_v24  ;;  %v539_v29 = vmul.f32 1.8, %v433_v43  ;;  %v477_v30 = vmul.f32 0.5, %v476_v14  ;;  %v393_v56 = vsel %vm392_vm1, %v819_v0, %v389_v44 }
 0x137   : > { %v355_v59 = vpop.xlane.xlu2 %354  ;;  %v535_v2 = vmul.f32 1.8, %v393_v56  ;;  %vm410_vm13 = vweird.f32 %v1151_v21  ;;  %vm440_vm2 = vweird.f32 %v1191_v49  ;;  %vm501_vm3 = vweird.f32 %v1109_v40 }
 0x138   : > { %v467_v58 = vmul.f32 0.5, %v466_v47  ;;  %v1193_v60 = vpop.eup %824  ;;  %v555_v1 = vmul.f32 %v539_v29, %v1041_v35  ;;  %v478_v4 = vsub.f32 1.5, %v477_v30  ;;  %v341_v32 = vpop.xlane.xlu1 %340  ;;  %v1205_v35 = vmax.f32 %v355_v59, 1e-24 }
 0x139   : > { %v485_v0 = vmul.f32 %v1193_v60, %v1147_v15  ;;  %v1201_v6 = vpop.eup %826  ;;  %v551_v8 = vmul.f32 %v535_v2, %v1043_v37  ;;  %v399_v37 = vmul.f32 %v1119_v48, %v398_v54  ;;  %vm491_vm9 = vweird.f32 %v1193_v60 }
 0x13a   : > { %v468_v5 = vsub.f32 1.5, %v467_v58  ;;  %v718_v7 = vpack.c.bf16 %v555_v1, %v554_v22  ;;  %v479_v9 = vmul.f32 %v1149_v17, %v478_v4  ;;  %v405_v13 = vmul.f32 %v1201_v6, %v1151_v21  ;;  %v357_v16 = vpop.xlane.xlu0 %356  ;;  %vm492_vm12 = vmor %vm490_vm7, %vm491_vm9 }
 0x13b   : > { %v486_v11 = vmul.f32 %v1193_v60, %v485_v0  ;;  %v708_v20 = vpack.c.bf16 %v551_v8, %v1143_v12  ;;  %830 = vrsqrt.f32 %v1205_v35  ;;  %v1227_v27 = vpop.eup %828  ;;  %v1241_v33 = vmax.f32 %v357_v16, 1e-24 }
 0x13c   : > { %v469_v10 = vmul.f32 %v1153_v25, %v468_v5  ;;  %746 = vst [vmem:[%s1214_s20 + $0x10] sm:$0xff] %v718_v7   ;;  %v406_v28 = vmul.f32 %v1201_v6, %v405_v13  ;;  %v483_v50 = vsel %vm1234_vm8, %v1149_v17, %v479_v9  ;;  %v435_v24 = vmul.f32 %v1227_v27, %v1191_v49 }
 0x13d   : > { %v487_v22 = vmul.f32 0.5, %v486_v11  ;;  %709 = vst [vmem:[%s1214_s20] sm:$0xff] %v708_v20   ;;  %v403_v41 = vsel %vm1247_vm10, %v1119_v48, %v399_v37  ;;  %vm411_vm11 = vweird.f32 %v1201_v6  ;;  %v544_v29 = vmul.f32 1.8, %v483_v50  ;;  %vm1322_vm10 = vmor %vm500_vm0, %vm501_vm3 }
 0x13e   : > { %v473_v23 = vsel %vm472_vm6, %v1153_v25, %v469_v10  ;;  %v1239_v25 = vmax.f32 %v341_v32, 1e-24  ;;  %v407_v38 = vmul.f32 0.5, %v406_v28  ;;  %v436_v44 = vmul.f32 %v1227_v27, %v435_v24  ;;  %vm412_vm14 = vmor %vm410_vm13, %vm411_vm11 }
 0x13f   : > { %v543_v57 = vmul.f32 1.8, %v473_v23  ;;  %v488_v36 = vsub.f32 1.5, %v487_v22  ;;  %v536_v58 = vmul.f32 1.8, %v403_v41  ;;  %v560_v2 = vmul.f32 %v544_v29, %v1055_v46 }
 0x140   : > { %832 = vrsqrt.f32 %v1239_v25  ;;  %v353_v26 = vpop.xlane.xlu1 %352  ;;  %v408_v17 = vsub.f32 1.5, %v407_v38  ;;  %v437_v54 = vmul.f32 0.5, %v436_v44  ;;  %v498_v0 = vsub.f32 1.5, %v1173_v42 }
 0x141   : > { %v559_v14 = vmul.f32 %v543_v57, %v1053_v45  ;;  %v489_v43 = vmul.f32 %v1193_v60, %v488_v36  ;;  %834 = vrsqrt.f32 %v1241_v33  ;;  %v1265_v47 = vpop.eup %830  ;;  %v1272_v45 = vmax.f32 %v353_v26, 1e-24 }
 0x142   : > { %v409_v51 = vmul.f32 %v1201_v6, %v408_v17  ;;  %v515_v56 = vmul.f32 %v1265_v47, %v1205_v35  ;;  %v438_v21 = vsub.f32 1.5, %v437_v54  ;;  %v552_v9 = vmul.f32 %v536_v58, %v1045_v39 }
 0x143   : > { %v728_v30 = vpack.c.bf16 %v559_v14, %v558_v19  ;;  %v493_v48 = vsel %vm492_vm12, %v1193_v60, %v489_v43  ;;  %836 = vrsqrt.f32 %v1272_v45  ;;  %vm441_vm15 = vweird.f32 %v1227_v27 }
 0x144   : > { %v545_v59 = vmul.f32 1.8, %v493_v48  ;;  %v413_v15 = vsel %vm412_vm14, %v1201_v6, %v409_v51  ;;  %v516_v1 = vmul.f32 %v1265_v47, %v515_v56  ;;  %v439_v13 = vmul.f32 %v1227_v27, %v438_v21  ;;  %vm1304_vm4 = vmor %vm440_vm2, %vm441_vm15 }
 0x145   : > { %748 = vst [vmem:[%s1214_s20 + $0x20] sm:$0xff] %v728_v30   ;;  %v537_v32 = vmul.f32 1.8, %v413_v15  ;;  %vm521_vm1 = vweird.f32 %v1265_v47  ;;  %v499_v20 = vmul.f32 %v1109_v40, %v498_v0  ;;  %vm520_vm5 = vweird.f32 %v1205_v35 }
 0x146   : > { %v833_v60 = vpop.eup %832  ;;  %v561_v4 = vmul.f32 %v545_v59, %v1065_v55  ;;  %v517_v7 = vmul.f32 0.5, %v516_v1  ;;  %v443_v49 = vsel %vm1304_vm4, %v1227_v27, %v439_v13  ;;  %vm1312_vm6 = vmor %vm520_vm5, %vm521_vm1  ;;  %vm530_vm8 = vweird.f32 %v1241_v33 }
 0x147   : > { %v835_v5 = vpop.eup %834  ;;  %v445_v8 = vmul.f32 %v833_v60, %v1239_v25  ;;  %v553_v6 = vmul.f32 %v537_v32, %v1061_v52  ;;  %vm451_vm7 = vweird.f32 %v833_v60  ;;  %vm450_vm11 = vweird.f32 %v1239_v25 }
 0x148   : > { %v733_v10 = vpack.c.bf16 %v561_v4, %v560_v2  ;;  %v525_v11 = vmul.f32 %v835_v5, %v1241_v33  ;;  %v518_v46 = vsub.f32 1.5, %v517_v7  ;;  %vm531_vm9 = vweird.f32 %v835_v5  ;;  %vm452_vm12 = vmor %vm450_vm11, %vm451_vm7 }
 0x149   : > { %v446_v55 = vmul.f32 %v833_v60, %v445_v8  ;;  %v837_v16 = vpop.eup %836  ;;  %v713_v42 = vpack.c.bf16 %v553_v6, %v552_v9  ;;  %v503_v38 = vsel %vm1322_vm10, %v1109_v40, %v499_v20  ;;  %v540_v24 = vmul.f32 1.8, %v443_v49  ;;  %vm532_vm13 = vmor %vm530_vm8, %vm531_vm9 }
 0x14a   : > { %749 = vst [vmem:[%s1214_s20 + $0x28] sm:$0xff] %v733_v10   ;;  %v526_v39 = vmul.f32 %v835_v5, %v525_v11  ;;  %v519_v52 = vmul.f32 %v1265_v47, %v518_v46  ;;  %v505_v37 = vmul.f32 %v837_v16, %v1272_v45  ;;  %vm511_vm14 = vweird.f32 %v837_v16 }
 0x14b   : > { %v447_v19 = vmul.f32 0.5, %v446_v55  ;;  %745 = vst [vmem:[%s1214_s20 + $0x8] sm:$0xff] %v713_v42   ;;  %vm510_vm15 = vweird.f32 %v1272_v45  ;;  %v546_v25 = vmul.f32 1.8, %v503_v38  ;;  %v556_v40 = vmul.f32 %v540_v24, %v1063_v53 }
 0x14c   : > { %v527_v22 = vmul.f32 0.5, %v526_v39  ;;  %v506_v57 = vmul.f32 %v837_v16, %v505_v37  ;;  %v523_v34 = vsel %vm1312_vm6, %v1265_v47, %v519_v52  ;;  %vm512_vm0 = vmor %vm510_vm15, %vm511_vm14 }
 0x14d   : > { %v448_v12 = vsub.f32 1.5, %v447_v19  ;;  %v548_v14 = vmul.f32 1.8, %v523_v34  ;;  %v562_v53 = vmul.f32 %v546_v25, %v1035_v31 }
 0x14e   : > { %v528_v50 = vsub.f32 1.5, %v527_v22  ;;  %v507_v36 = vmul.f32 0.5, %v506_v57 }
 0x14f   : > { %v449_v27 = vmul.f32 %v833_v60, %v448_v12  ;;  %v564_v29 = vmul.f32 %v548_v14, %v1073_v61 }
 0x150   : > { %v529_v41 = vmul.f32 %v835_v5, %v528_v50  ;;  %v508_v26 = vsub.f32 1.5, %v507_v36 }
 0x151   : > { %v453_v33 = vsel %vm452_vm12, %v833_v60, %v449_v27 }
 0x152   : > { %v541_v18 = vmul.f32 1.8, %v453_v33  ;;  %v533_v43 = vsel %vm532_vm13, %v835_v5, %v529_v41  ;;  %v509_v44 = vmul.f32 %v837_v16, %v508_v26 }
 0x153   : > { %v549_v17 = vmul.f32 1.8, %v533_v43 }
 0x154   : > { %v557_v47 = vmul.f32 %v541_v18, %v1075_v62  ;;  %v513_v48 = vsel %vm512_vm0, %v837_v16, %v509_v44 }
 0x155   : > { %v565_v30 = vmul.f32 %v549_v17, %v1077_v63  ;;  %v547_v45 = vmul.f32 1.8, %v513_v48 }
 0x156   : > { %v723_v51 = vpack.c.bf16 %v557_v47, %v556_v40 }
 0x157   : > { %v743_v54 = vpack.c.bf16 %v565_v30, %v564_v29  ;;  %v563_v62 = vmul.f32 %v547_v45, %v1085_v3 }
 0x158   : > { %747 = vst [vmem:[%s1214_s20 + $0x18] sm:$0xff] %v723_v51  }
 0x159   : > { %751 = vst [vmem:[%s1214_s20 + $0x38] sm:$0xff] %v743_v54   ;;  %v738_v56 = vpack.c.bf16 %v563_v62, %v562_v53 }
 0x15b   : > { %750 = vst [vmem:[%s1214_s20 + $0x30] sm:$0xff] %v738_v56  }
 0x15c   : > { %865 = shalt.err (!%p862_p3)
}
 0x15d   : > { %s902_s10 = smov 64   ;;  %s903_s11 = smov 4  }
 0x15e   : > { %764 = dma.vmem_to_hbm [thread:$0]  (%p962_p5), %s612_s16, 1024, %s614_s28, %s599_s29, %s902_s10, %s902_s10, %s903_s11  }
 0x15f PF: > { %p770_p4 = scmp.ge.s32.totalorder %s900_s15, 2  ;;  %s628_s17 = sand.u32 1, %s888_s12  }
 0x160   : > { %s629_s19 = scalar_lea.sflag [#allocation3], %s628_s17 }
 0x161   : > { %p767_p7 = pnand %p770_p4, %p966_p6 }
 0x163   : > { %p768_p8 = pneg %p767_p7 }
 0x165   : > { %883 = dma.done.wait (%p768_p8), %s629_s19, 1024  }
 0x166   : > { %885 = vsyncadd (%p768_p8), %s629_s19, 4294966272  ;;  %p13_p9 = scmp.ge.s32.totalorder %s949_s18, 4   ;;  %s1396_s12 = smov %s892_s13 }
 0x167   : > { %s1397_s13 = smov %s896_s14  ;;  %s1398_s14 = smov %s960_s21 }
 0x168   : > { %s1399_s15 = smov %s949_s18  ;;  %15 = sbr.rel (!%p13_p9) target bundleno = 3 (0x3), region = 67 }
 0x16d   :  { %635 = vsyncpa [#allocation3], 1 }
 0x16e   :  { %637 = vsyncpa [#allocation3 + $0x1], 1 }

</bundles_post_ra>
